<compile_context>
chip_gen: v7x
topology: tpu7x:2x2x1
jax: 0.10.0
libtpu: 0.0.40
codegen_flags: <defaults>
</compile_context>

<pallas_src>
import math
import jax
import jax.numpy as jnp
from jax.experimental import pallas as pl
from jax.experimental.pallas import tpu as pltpu

_MiB = 1 << 20


def _round_up(x, m):
    return ((x + m - 1) // m) * m


def _sublane(dtype):
    """Packed sublane multiple for the second-minor dim."""
    return {4: 8, 2: 16, 1: 32}.get(jnp.dtype(dtype).itemsize, 8)


def _pick_tile(dim, cap, lane=128):
    """Largest lane-aligned tile <= cap.  Prefers tiles that divide `dim`
    exactly (avoids wrapper-side padding) and that are 256-multiples
    (full MXU width on v6e/v7x)."""
    if dim <= cap:
        return _round_up(dim, lane)
    cap = max(lane, (cap // lane) * lane)
    divisors = [t for t in range(cap, lane - 1, -lane) if dim % t == 0]
    for t in divisors:
        if t % 256 == 0:
            return t
    if divisors:
        return divisors[0]
    return cap          # ragged dim: pad once in the wrapper


def _footprint_bytes(tm, tn, tk, in_size, out_size, has_adapt, has_bias, use_acc):
    f = 2 * (tm * tk + tn * tk) * in_size      # double-buffered x / weight tiles
    f += 2 * tm * tn * out_size                # double-buffered output tile
    if has_adapt:
        f += 2 * tk * in_size
    if has_bias:
        f += 2 * tn * in_size
    if use_acc:
        f += tm * tn * 4                       # single-buffered f32 scratch
    return f


def _make_kernel(has_adapt, has_bias, use_acc):
    """Kernel specialized on adapt/bias presence and on whether a separate
    f32 accumulator scratch is needed (only for non-f32 outputs)."""

    def kernel(*refs):
        idx = 0
        x_ref = refs[idx]; idx += 1            # (tm, tk)
        w_ref = refs[idx]; idx += 1            # (tn, tk)
        a_ref = None
        b_ref = None
        if has_adapt:
            a_ref = refs[idx]; idx += 1        # (1, tk)
        if has_bias:
            b_ref = refs[idx]; idx += 1        # (1, tn)
        o_ref = refs[idx]; idx += 1            # (tm, tn)
        acc_ref = refs[idx] if use_acc else o_ref   # f32 accumulator target

        k = pl.program_id(2)

        @pl.when(k == 0)
        def _():
            acc_ref[...] = jnp.zeros_like(acc_ref)

        x = x_ref[...]
        if has_adapt:
            # (x * a) @ W.T == x @ (W * a).T since a broadcasts over dim_in.
            x = x * a_ref[...]

        acc_ref[...] += jax.lax.dot_general(
            x, w_ref[...],
            dimension_numbers=(((1,), (1,)), ((), ())),   # contract K with K
            preferred_element_type=jnp.float32)

        if use_acc or has_bias:
            @pl.when(k == pl.num_programs(2) - 1)
            def _():
                if use_acc:
                    out = acc_ref[...]
                    if has_bias:
                        out = out + b_ref[...]
                    o_ref[...] = out.astype(o_ref.dtype)
                else:
                    o_ref[...] += b_ref[...]

    return kernel


def linear_with_param_adapt(x, weight, bias=None, adapt_vector=None,
                            *, tm=None, tn=None, tk=None):
    """y = x @ (weight * adapt_vector).T + bias, computed in a Pallas kernel."""
    M, K = x.shape
    N, K2 = weight.shape
    assert K == K2, "dim_in mismatch"

    has_adapt = adapt_vector is not None
    has_bias = bias is not None
    out_dtype = x.dtype
    use_acc = jnp.dtype(out_dtype) != jnp.dtype(jnp.float32)
    in_size = jnp.dtype(x.dtype).itemsize
    out_size = jnp.dtype(out_dtype).itemsize

    # ---- generation-aware VMEM budget --------------------------------------
    try:
        vmem_cap = pltpu.get_tpu_info().vmem_capacity_bytes
    except Exception:
        vmem_cap = 64 * _MiB                    # conservative (v7x-like)
    big_vmem = vmem_cap >= 100 * _MiB           # v5e / v6e: 128 MiB physical
    budget = (64 * _MiB) if big_vmem else (24 * _MiB)

    # ---- tile selection -----------------------------------------------------
    sub = _sublane(x.dtype)
    tm = tm if tm is not None else min(256, _round_up(M, sub))
    grid_m = (M + tm - 1) // tm

    if big_vmem:
        cands = [(2048, 2048), (2048, 1024), (1024, 1024), (1024, 512),
                 (512, 512), (512, 256), (256, 256), (128, 128)]
    else:
        cands = [(2048, 1024), (1024, 1024), (1024, 512), (512, 512),
                 (512, 256), (256, 256), (128, 128)]

    tn_sel = tk_sel = None
    for tn_cap, tk_cap in cands:
        # v7x (2 TCs): for GEMV-like calls (single M tile) keep >=2 N tiles so
        # the parallel N grid axis can shard across both cores.
        if (not big_vmem) and grid_m == 1 and N > 256:
            tn_cap = min(tn_cap, max(128, ((N // 2) // 128) * 128))
        tn_c = tn if tn is not None else _pick_tile(N, tn_cap)
        tk_c = tk if tk is not None else _pick_tile(K, tk_cap)
        if _footprint_bytes(tm, tn_c, tk_c, in_size, out_size,
                            has_adapt, has_bias, use_acc) <= budget:
            tn_sel, tk_sel = tn_c, tk_c
            break
    if tn_sel is None:
        tn_sel = tn if tn is not None else _pick_tile(N, 128)
        tk_sel = tk if tk is not None else _pick_tile(K, 128)
    tn, tk = tn_sel, tk_sel

    Mp = _round_up(M, tm)
    Np = _round_up(N, tn)
    Kp = _round_up(K, tk)

    # ---- pad only when unavoidable (ragged shapes) --------------------------
    x_p = x
    if (Mp, Kp) != (M, K):
        x_p = jnp.pad(x, ((0, Mp - M), (0, Kp - K)))
    w_p = weight
    if (Np, Kp) != (N, K):
        w_p = jnp.pad(weight, ((0, Np - N), (0, Kp - K)))

    args = [x_p, w_p]
    in_specs = [
        pl.BlockSpec((tm, tk), lambda i, j, k: (i, k)),   # x tile
        pl.BlockSpec((tn, tk), lambda i, j, k: (j, k)),   # weight tile (N,K)
    ]

    if has_adapt:
        a2 = adapt_vector.astype(x.dtype).reshape(1, K)
        if Kp != K:
            a2 = jnp.pad(a2, ((0, 0), (0, Kp - K)))
        args.append(a2)
        in_specs.append(pl.BlockSpec((1, tk), lambda i, j, k: (0, k)))

    if has_bias:
        b2 = bias.astype(x.dtype).reshape(1, N)
        if Np != N:
            b2 = jnp.pad(b2, ((0, 0), (0, Np - N)))
        args.append(b2)
        in_specs.append(pl.BlockSpec((1, tn), lambda i, j, k: (0, j)))

    grid = (Mp // tm, Np // tn, Kp // tk)

    # Cost estimate with re-read factors (x read grid_n times, w read grid_m).
    cost = pl.CostEstimate(
        flops=2 * Mp * Np * Kp,
        transcendentals=0,
        bytes_accessed=int((Mp * Kp * grid[1] + Np * Kp * grid[0]) * in_size
                           + Mp * Np * out_size),
    )

    footprint = _footprint_bytes(tm, tn, tk, in_size, out_size,
                                 has_adapt, has_bias, use_acc)
    vmem_limit = min(96 * _MiB if big_vmem else 32 * _MiB,
                     max(32 * _MiB, footprint + 8 * _MiB))

    scratch_shapes = [pltpu.VMEM((tm, tn), jnp.float32)] if use_acc else []

    out = pl.pallas_call(
        _make_kernel(has_adapt, has_bias, use_acc),
        out_shape=jax.ShapeDtypeStruct((Mp, Np), out_dtype),
        grid_spec=pltpu.PrefetchScalarGridSpec(
            num_scalar_prefetch=0,
            grid=grid,
            in_specs=in_specs,
            out_specs=pl.BlockSpec((tm, tn), lambda i, j, k: (i, j)),
            scratch_shapes=scratch_shapes,
        ),
        compiler_params=pltpu.CompilerParams(
            dimension_semantics=("parallel", "parallel", "arbitrary"),
            vmem_limit_bytes=int(vmem_limit)),
        cost_estimate=cost,
    )(*args)

    if (Mp, Np) != (M, N):
        out = out[:M, :N]
    return out


def init_params(key, dim_in, dim_out, use_bias=True, dtype=jnp.float32):
    """Deterministic re-implementation of the module's __init__ initialization."""
    k_w, k_b = jax.random.split(key)
    # kaiming_uniform_(a=sqrt(5)) on (dim_out, dim_in): bound = 1/sqrt(dim_in)
    w_bound = 1.0 / math.sqrt(dim_in)
    weight = jax.random.uniform(k_w, (dim_out, dim_in), dtype,
                                minval=-w_bound, maxval=w_bound)
    bias = None
    if use_bias:
        b_bound = 1.0 / math.sqrt(dim_out)
        bias = jax.random.uniform(k_b, (dim_out,), dtype,
                                  minval=-b_bound, maxval=b_bound)
    return weight, bias


if __name__ == "__main__":
    key = jax.random.PRNGKey(0)
    keys = jax.random.split(key, 12)

    # ---- 1) aligned demo shapes (MNIST-MLP-like layer) ----------------------
    batch, dim_in, dim_out = 8, 128, 128
    weight, bias = init_params(keys[0], dim_in, dim_out, use_bias=True)
    x = jax.random.normal(keys[1], (batch, dim_in), jnp.float32)
    adapt_vector = jax.random.uniform(keys[2], (dim_in,), jnp.float32,
                                      minval=0.5, maxval=1.5)

    y = jax.block_until_ready(linear_with_param_adapt(x, weight, bias, adapt_vector))
    y_no_adapt = jax.block_until_ready(linear_with_param_adapt(x, weight, bias, None))
    y_no_bias = jax.block_until_ready(linear_with_param_adapt(x, weight, None, adapt_vector))

    ref = x @ (weight * adapt_vector).T + bias
    ref_no_adapt = x @ weight.T + bias
    ref_no_bias = x @ (weight * adapt_vector).T
    assert jnp.allclose(y, ref, atol=1e-4, rtol=1e-4)
    assert jnp.allclose(y_no_adapt, ref_no_adapt, atol=1e-4, rtol=1e-4)
    assert jnp.allclose(y_no_bias, ref_no_bias, atol=1e-4, rtol=1e-4)

    # ---- 2) unaligned shapes (exercises padding / slicing fallback) ---------
    b2, di2, do2 = 5, 200, 96
    w2, bi2 = init_params(keys[3], di2, do2, use_bias=True)
    x2 = jax.random.normal(keys[4], (b2, di2), jnp.float32)
    a2 = jax.random.uniform(keys[5], (di2,), jnp.float32, minval=0.5, maxval=1.5)

    y2 = jax.block_until_ready(linear_with_param_adapt(x2, w2, bi2, a2))
    ref2 = x2 @ (w2 * a2).T + bi2
    assert y2.shape == ref2.shape
    assert jnp.allclose(y2, ref2, atol=1e-4, rtol=1e-4)

    # ---- 3) multi-tile grid with forced small tiles (K accumulation into the
    #         resident f32 output block, no scratch) --------------------------
    b3, di3, do3 = 16, 384, 256
    w3, bi3 = init_params(keys[6], di3, do3, use_bias=True)
    x3 = jax.random.normal(keys[7], (b3, di3), jnp.float32)
    a3 = jax.random.uniform(keys[8], (di3,), jnp.float32, minval=0.5, maxval=1.5)

    y3 = jax.block_until_ready(
        linear_with_param_adapt(x3, w3, bi3, a3, tm=16, tn=128, tk=128))
    ref3 = x3 @ (w3 * a3).T + bi3
    assert jnp.allclose(y3, ref3, atol=1e-3, rtol=1e-3)

    # ---- 4) bf16 activations (exercises the f32 accumulator-scratch path) ---
    b4, di4, do4 = 16, 256, 128
    w4, bi4 = init_params(keys[9], di4, do4, use_bias=True, dtype=jnp.bfloat16)
    x4 = jax.random.normal(keys[10], (b4, di4), jnp.bfloat16)
    a4 = jax.random.uniform(keys[11], (di4,), jnp.bfloat16, minval=0.5, maxval=1.5)

    y4 = jax.block_until_ready(
        linear_with_param_adapt(x4, w4, bi4, a4, tk=128))
    ref4 = (x4 * a4) @ w4.T + bi4
    assert jnp.allclose(y4.astype(jnp.float32), ref4.astype(jnp.float32),
                        atol=2e-1, rtol=2e-2)

    print("KERNEL_OK")
</pallas_src>

<mosaic_0001>
module attributes {stable_mosaic.version = 11 : i64} {
  func.func @kernel(%arg0: i32, %arg1: i32, %arg2: i32, %arg3: memref<8x128xf32, #tpu.memory_space<vmem>>, %arg4: memref<128x128xf32, #tpu.memory_space<vmem>>, %arg5: memref<1x128xf32, #tpu.memory_space<vmem>>, %arg6: memref<1x128xf32, #tpu.memory_space<vmem>>, %arg7: memref<8x128xf32, #tpu.memory_space<vmem>>) attributes {dimension_semantics = [#tpu.dimension_semantics<parallel>, #tpu.dimension_semantics<parallel>, #tpu.dimension_semantics<arbitrary>], iteration_bounds = array<i64: 1, 1, 1>, scalar_prefetch = 0 : i64, scratch_operands = 0 : i64, tpu.core_type = #tpu.core_type<tc>, window_params = [{transform_indices = @transform_0, window_bounds = array<i64: 8, 128>}, {transform_indices = @transform_1, window_bounds = array<i64: 128, 128>}, {transform_indices = @transform_2, window_bounds = array<i64: 1, 128>}, {transform_indices = @transform_3, window_bounds = array<i64: 1, 128>}, {transform_indices = @transform_4, window_bounds = array<i64: 8, 128>}]} {
    %c0_i32 = arith.constant 0 : i32
    %0 = arith.cmpi eq, %arg2, %c0_i32 : i32
    %1 = arith.extui %0 : i1 to i32
    %c0_i32_0 = arith.constant 0 : i32
    %2 = arith.cmpi ne, %1, %c0_i32_0 : i32
    scf.if %2 {
      %cst_12 = arith.constant 0.000000e+00 : f32
      %15 = vector.broadcast %cst_12 : f32 to vector<8x128xf32>
      %c0_13 = arith.constant 0 : index
      %c0_14 = arith.constant 0 : index
      %16 = vector.load %arg7[%c0_13, %c0_14] : memref<8x128xf32, #tpu.memory_space<vmem>>, vector<8x128xf32>
      tpu.vector_store %arg7[%c0_13, %c0_14], %15 {strides = array<i32>} : memref<8x128xf32, #tpu.memory_space<vmem>>, vector<8x128xf32>,
    } else {
    }
    %c0 = arith.constant 0 : index
    %c0_1 = arith.constant 0 : index
    %3 = vector.load %arg3[%c0, %c0_1] : memref<8x128xf32, #tpu.memory_space<vmem>>, vector<8x128xf32>
    %c0_2 = arith.constant 0 : index
    %c0_3 = arith.constant 0 : index
    %4 = vector.load %arg5[%c0_2, %c0_3] : memref<1x128xf32, #tpu.memory_space<vmem>>, vector<1x128xf32>
    %5 = vector.broadcast %4 : vector<1x128xf32> to vector<8x128xf32>
    %6 = arith.mulf %3, %5 : vector<8x128xf32>
    %c0_4 = arith.constant 0 : index
    %c0_5 = arith.constant 0 : index
    %7 = vector.load %arg7[%c0_4, %c0_5] : memref<8x128xf32, #tpu.memory_space<vmem>>, vector<8x128xf32>
    %c0_6 = arith.constant 0 : index
    %c0_7 = arith.constant 0 : index
    %8 = vector.load %arg4[%c0_6, %c0_7] : memref<128x128xf32, #tpu.memory_space<vmem>>, vector<128x128xf32>
    %cst = arith.constant dense<0.000000e+00> : vector<8x128xf32>
    %9 = tpu.matmul %6, %8, %cst {dimension_numbers = #tpu.dot_dimension_numbers<[1], [1], [0], [0], [0, 0, 1, 0], [], []>} : vector<8x128xf32>, vector<128x128xf32>, vector<8x128xf32> -> vector<8x128xf32>
    %10 = arith.addf %7, %9 : vector<8x128xf32>
    %c0_8 = arith.constant 0 : index
    %c0_9 = arith.constant 0 : index
    %11 = vector.load %arg7[%c0_8, %c0_9] : memref<8x128xf32, #tpu.memory_space<vmem>>, vector<8x128xf32>
    tpu.vector_store %arg7[%c0_8, %c0_9], %10 {strides = array<i32>} : memref<8x128xf32, #tpu.memory_space<vmem>>, vector<8x128xf32>,
    %c0_i32_10 = arith.constant 0 : i32
    %12 = arith.cmpi eq, %arg2, %c0_i32_10 : i32
    %13 = arith.extui %12 : i1 to i32
    %c0_i32_11 = arith.constant 0 : i32
    %14 = arith.cmpi ne, %13, %c0_i32_11 : i32
    scf.if %14 {
      %c0_12 = arith.constant 0 : index
      %c0_13 = arith.constant 0 : index
      %15 = vector.load %arg7[%c0_12, %c0_13] : memref<8x128xf32, #tpu.memory_space<vmem>>, vector<8x128xf32>
      %c0_14 = arith.constant 0 : index
      %c0_15 = arith.constant 0 : index
      %16 = vector.load %arg6[%c0_14, %c0_15] : memref<1x128xf32, #tpu.memory_space<vmem>>, vector<1x128xf32>
      %17 = vector.broadcast %16 : vector<1x128xf32> to vector<8x128xf32>
      %18 = arith.addf %15, %17 : vector<8x128xf32>
      %c0_16 = arith.constant 0 : index
      %c0_17 = arith.constant 0 : index
      %19 = vector.load %arg7[%c0_16, %c0_17] : memref<8x128xf32, #tpu.memory_space<vmem>>, vector<8x128xf32>
      tpu.vector_store %arg7[%c0_16, %c0_17], %18 {strides = array<i32>} : memref<8x128xf32, #tpu.memory_space<vmem>>, vector<8x128xf32>,
    } else {
    }
    return
  }
  func.func @transform_0(%arg0: i32, %arg1: i32, %arg2: i32) -> (i32, i32) {
    %c0_i32 = arith.constant 0 : i32
    return %arg0, %arg2 : i32, i32
  }
  func.func @transform_1(%arg0: i32, %arg1: i32, %arg2: i32) -> (i32, i32) {
    %c0_i32 = arith.constant 0 : i32
    return %arg1, %arg2 : i32, i32
  }
  func.func @transform_2(%arg0: i32, %arg1: i32, %arg2: i32) -> (i32, i32) {
    %c0_i32 = arith.constant 0 : i32
    %c0_i32_0 = arith.constant 0 : i32
    return %c0_i32, %arg2 : i32, i32
  }
  func.func @transform_3(%arg0: i32, %arg1: i32, %arg2: i32) -> (i32, i32) {
    %c0_i32 = arith.constant 0 : i32
    %c0_i32_0 = arith.constant 0 : i32
    return %c0_i32, %arg1 : i32, i32
  }
  func.func @transform_4(%arg0: i32, %arg1: i32, %arg2: i32) -> (i32, i32) {
    %c0_i32 = arith.constant 0 : i32
    return %arg0, %arg1 : i32, i32
  }
}

</mosaic_0001>

<bundles_post_ra>
// kernel: tpu_custom_call.1
= control target key start
LH: loop header
LB: loop body
LE: loop exit
PB: predicated region body
PF: predicated region fallthrough
CT: control target
= control target key end

     0   :  { %9 = vsyncpa [#allocation3], 0  ;;  %s416_s0 = inlined_call_operand.hbm [shape: f32[8,128], index: 0, kind: input, shape index: {}]   ;;  %s417_s1 = inlined_call_operand.hbm [shape: f32[128,128], index: 1, kind: input, shape index: {}]   ;;  %s418_s2 = inlined_call_operand.vmem [shape: f32[1,128], index: 2, kind: input, shape index: {}]   ;;  %s419_s3 = inlined_call_operand.vmem [shape: f32[1,128], index: 3, kind: input, shape index: {}]   ;;  %s420_s4 = inlined_call_operand.hbm [shape: f32[8,128], index: 4, kind: output, shape index: {}]  }
   0x1   :  { %10 = vsyncpa [#allocation6], 0 }
   0x2   :  { %11 = vsyncpa [#allocation4], 0  ;;  %s334_s15 = smov [#allocation2]   ;;  %s335_s17 = smov [#allocation5]  }
   0x3   :  { %s18_s16 = sshll.u32 %s334_s15, 4  ;;  %s27_s18 = sshll.u32 %s335_s17, 4  ;;  %s19_s16 = int_to_ptr.vmem [resolvable:$true] %s18_s16  ;;  %s367_s18 = int_to_ptr.vmem [resolvable:$true] %s27_s18 }
   0x4   :  { %s262_s21 = scalar_lea.hbm %s416_s0, 128 }
   0x5   :  { %p263_p0 = scmp.ne.s32.totalorder %s416_s0, %s262_s21  ;;  %p266_p1 = scmp.lt.u32.totalorder %s262_s21, %s416_s0 }
   0x7   :  { %p268_p2 = pnand %p266_p1, %p263_p0 }
   0x9   :  { %271 = shalt.err (!%p268_p2)
}
   0xa   :  { %s272_s26 = scalar_lea.vmem %s19_s16, 128  ;;  %p277_p4 = scmp.lt.s32.totalorder %s19_s16, %s19_s16 }
   0xb   :  { %p273_p3 = scmp.ne.s32.totalorder %s19_s16, %s272_s26  ;;  %p278_p5 = scmp.lt.s32.totalorder %s272_s26, %s272_s26 }
   0xd   :  { %p279_p6 = por %p278_p5, %p277_p4 }
   0xf   :  { %p280_p7 = pnand %p279_p6, %p273_p3 }
  0x11   :  { %283 = shalt.err (!%p280_p7)
}
  0x12   :  { %21 = dma.hbm_to_vmem [thread:$0]  %s416_s0, 128, %s19_s16, [#allocation3]  }
  0x13   :  { %s284_s5 = scalar_lea.hbm %s417_s1, 2048 }
  0x14   :  { %p285_p8 = scmp.ne.s32.totalorder %s417_s1, %s284_s5  ;;  %p288_p9 = scmp.lt.u32.totalorder %s284_s5, %s417_s1 }
  0x16   :  { %p290_p10 = pnand %p288_p9, %p285_p8 }
  0x18   :  { %293 = shalt.err (!%p290_p10)
}
  0x19   :  { %s294_s10 = scalar_lea.vmem %s367_s18, 2048  ;;  %p299_p12 = scmp.lt.s32.totalorder %s367_s18, %s367_s18 }
  0x1a   :  { %p295_p11 = scmp.ne.s32.totalorder %s367_s18, %s294_s10  ;;  %p300_p13 = scmp.lt.s32.totalorder %s294_s10, %s294_s10 }
  0x1c   :  { %p301_p0 = por %p300_p13, %p299_p12 }
  0x1e   :  { %p302_p1 = pnand %p301_p0, %p295_p11 }
  0x20   :  { %305 = shalt.err (!%p302_p1)
}
  0x21   :  { %s336_s0 = smov 128   ;;  %s337_s11 = smov 8  }
  0x22   :  { %33 = dma.hbm_to_vmem [thread:$0]  %s417_s1, 2048, %s367_s18, [#allocation6], %s336_s0, %s336_s0, %s337_s11  }
  0x23   :  { %328 = dma.done.wait [#allocation3], 128  }
  0x24   :  { %329 = vsyncadd [#allocation3], 4294967168 }
  0x25   :  { %330 = dma.done.wait [#allocation6], 2048  }
  0x26   :  { %331 = vsyncadd [#allocation6], 4294965248  ;;  %v338_v0 = vmov 0.0|0.0   ;;  %vm339_vm0 = vmmov 0   ;;  %v340_v1 = vmov 0.0   ;;  %v59_v2 = vld [vmem:[#allocation5] sm:$0xff] }
  0x27   :  { %230 = vmatprep.subr.bf16.mxu0 %v338_v0  ;;  %227 = vmatprep.mubr.msk.f32.mxu0 %vm339_vm0, %v340_v1  ;;  %v60_v3 = vld [vmem:[#allocation5 + $0x8] sm:$0xff]  ;;  %v61_v5 = vld [vmem:[#allocation5 + $0x10] sm:$0xff]  ;;  %v62_v6 = vld [vmem:[#allocation5 + $0x18] sm:$0xff]  ;;  %s341_s17 = smov [#allocation7]  }
  0x28   :  { %v231_v4 = vpack.c.bf16 %v60_v3, %v59_v2  ;;  %v234_v7 = vpack.c.bf16 %v62_v6, %v61_v5  ;;  %v63_v8 = vld [vmem:[#allocation5 + $0x20] sm:$0xff]  ;;  %v64_v9 = vld [vmem:[#allocation5 + $0x28] sm:$0xff]  ;;  %v65_v11 = vld [vmem:[#allocation5 + $0x30] sm:$0xff]  ;;  %s166_s18 = sshll.u32 %s341_s17, 4  ;;  %s167_s18 = int_to_ptr.vmem [resolvable:$true] %s166_s18 }
  0x29   :  { %v237_v10 = vpack.c.bf16 %v64_v9, %v63_v8  ;;  %v66_v12 = vld [vmem:[#allocation5 + $0x38] sm:$0xff]  ;;  %v67_v14 = vld [vmem:[#allocation5 + $0x40] sm:$0xff]  ;;  %v68_v15 = vld [vmem:[#allocation5 + $0x48] sm:$0xff]  ;;  %s306_s19 = scalar_lea.vmem %s167_s18, 128  ;;  %p311_p3 = scmp.lt.s32.totalorder %s167_s18, %s167_s18 }
  0x2a   :  { %232 = vmatpush3.bf16.xpose.msra.mxu0 %v231_v4  ;;  %v240_v13 = vpack.c.bf16 %v66_v12, %v65_v11  ;;  %v243_v16 = vpack.c.bf16 %v68_v15, %v67_v14  ;;  %v69_v17 = vld [vmem:[#allocation5 + $0x50] sm:$0xff]  ;;  %v70_v18 = vld [vmem:[#allocation5 + $0x58] sm:$0xff]  ;;  %v71_v20 = vld [vmem:[#allocation5 + $0x60] sm:$0xff]  ;;  %p307_p2 = scmp.ne.s32.totalorder %s167_s18, %s306_s19  ;;  %p312_p4 = scmp.lt.s32.totalorder %s306_s19, %s306_s19 }
  0x2b   :  { %233 = vmatprep.subr.bf16.mxu0 %v338_v0  ;;  %v246_v19 = vpack.c.bf16 %v70_v18, %v69_v17  ;;  %v72_v21 = vld [vmem:[#allocation5 + $0x68] sm:$0xff]  ;;  %v73_v23 = vld [vmem:[#allocation5 + $0x70] sm:$0xff]  ;;  %v74_v24 = vld [vmem:[#allocation5 + $0x78] sm:$0xff] }
  0x2c   :  { %v249_v22 = vpack.c.bf16 %v72_v21, %v71_v20  ;;  %v252_v25 = vpack.c.bf16 %v74_v24, %v73_v23  ;;  %v49_v26 = vld [vmem:[#allocation2] sm:$0xff]  ;;  %p313_p5 = por %p312_p4, %p311_p3 }
  0x2d   :  { %v176_v27 = vld [vmem:[%s418_s2] ss:$0 sm:$0xff] }
  0x2e   :  { %v57_v28 = vmul.f32 %v176_v27, %v49_v26  ;;  %v177_v30 = vld [vmem:[%s419_s3] ss:$0 sm:$0xff]  ;;  %p314_p6 = pnand %p313_p5, %p307_p2 }
  0x32   :  { %235 = vmatpush3.bf16.xpose.msra.mxu0 %v234_v7 }
  0x33   :  { %236 = vmatprep.subr.bf16.mxu0 %v338_v0 }
  0x3a   :  { %238 = vmatpush3.bf16.xpose.msra.mxu0 %v237_v10 }
  0x3b   :  { %239 = vmatprep.subr.bf16.mxu0 %v338_v0 }
  0x42   :  { %241 = vmatpush3.bf16.xpose.msra.mxu0 %v240_v13 }
  0x43   :  { %242 = vmatprep.subr.bf16.mxu0 %v338_v0 }
  0x4a   :  { %244 = vmatpush3.bf16.xpose.msra.mxu0 %v243_v16 }
  0x4b   :  { %245 = vmatprep.subr.bf16.mxu0 %v338_v0 }
  0x52   :  { %247 = vmatpush3.bf16.xpose.msra.mxu0 %v246_v19 }
  0x53   :  { %248 = vmatprep.subr.bf16.mxu0 %v338_v0 }
  0x5a   :  { %250 = vmatpush3.bf16.xpose.msra.mxu0 %v249_v22 }
  0x5b   :  { %251 = vmatprep.subr.bf16.mxu0 %v338_v0 }
  0x62   :  { %253 = vmatpush3.bf16.xpose.msra.mxu0 %v252_v25 }
  0x69   :  { %228 = vmatmul.mubr.f32.vlgmr.msra.gmra.mrb[0].mxu0 %v57_v28 }
 0x13c   :  { %v141_v29 = vpop.f32.mrb[0].mxu0 }
 0x13d   :  { %v229_v31 = vpop.f32.mrb[1].mxu0  ;;  %v158_v32 = vadd.f32 %v177_v30, %v141_v29 }
 0x13f   :  { %159 = vst [vmem:[#allocation7] sm:$0xff] %v158_v32 }
 0x140   :  { %317 = shalt.err (!%p314_p6)
}
 0x141   :  { %s318_s21 = scalar_lea.hbm %s420_s4, 128 }
 0x142   :  { %p319_p7 = scmp.ne.s32.totalorder %s420_s4, %s318_s21  ;;  %p322_p8 = scmp.lt.u32.totalorder %s318_s21, %s420_s4 }
 0x144   :  { %p324_p9 = pnand %p322_p8, %p319_p7 }
 0x146   :  { %327 = shalt.err (!%p324_p9)
}
 0x147   :  { %169 = dma.vmem_to_hbm [thread:$0]  %s167_s18, 128, %s420_s4, [#allocation4]  }
 0x148   :  { %332 = dma.done.wait [#allocation4], 128  }
 0x149   :  { %333 = vsyncadd [#allocation4], 4294967168 }
 0x14a   :  { %173 = vsyncpa [#allocation3], 1 }
 0x14b   :  { %174 = vsyncpa [#allocation6], 1 }
 0x14c   :  { %175 = vsyncpa [#allocation4], 1 }

</bundles_post_ra>
